<compile_context>
chip_gen: v7x
topology: tpu7x:2x2x1
jax: 0.10.0
libtpu: 0.0.40
codegen_flags: <defaults>
</compile_context>

<pallas_src>
import functools

import jax
import jax.numpy as jnp
from jax.experimental import pallas as pl
from jax.experimental.pallas import tpu as pltpu

LANES = 128
SUBLANES = 8
# Align rows to 32 so the block shape is legal for f32/bf16/int8 sublane packing.
ALIGN_ROWS = 32
# ~512 KiB per input block (f32); measured sweet spot for HBM roofline.
DEFAULT_ROW_TILE = 1024


def _focal_loss_kernel(x_ref, t_ref, out_ref, *, gamma, n, row_tile, needs_mask):
    x = x_ref[...].astype(jnp.float32)
    t = t_ref[...].astype(jnp.float32)

    # Numerically-stable binary_cross_entropy_with_logits (matches PyTorch):
    #   ce = max(x, 0) - x*t + log(1 + exp(-|x|))
    ce = jnp.maximum(x, 0.0) - x * t + jnp.log1p(jnp.exp(-jnp.abs(x)))
    pt = jnp.exp(-ce)
    one_minus_pt = 1.0 - pt

    # (1 - pt)**gamma: small integer gammas as repeated multiplies (VALU) instead
    # of float pow (exp + log on the EUP, which is the saturating slot).
    if float(gamma) == int(gamma) and 0 <= int(gamma) <= 4:
        g = int(gamma)
        if g == 0:
            w = jnp.ones_like(one_minus_pt)
        else:
            w = one_minus_pt
            for _ in range(g - 1):
                w = w * one_minus_pt
    else:
        w = one_minus_pt ** gamma

    focal = w * ce  # alpha is applied once on the final scalar in the wrapper

    if needs_mask:
        # Zero the contribution of padded / out-of-bounds elements.
        i = pl.program_id(0)
        row = jax.lax.broadcasted_iota(jnp.int32, focal.shape, 0)
        lane = jax.lax.broadcasted_iota(jnp.int32, focal.shape, 1)
        idx = (i * row_tile + row) * LANES + lane
        focal = jnp.where(idx < n, focal, 0.0)

    # Partial reduction to one vreg (8,128): adds across whole vregs (pure VALU);
    # the cross-lane/sublane reduce happens once, in the wrapper.
    partial = focal.reshape(row_tile // SUBLANES, SUBLANES, LANES).sum(axis=0)
    out_ref[...] = partial.reshape(1, SUBLANES, LANES)


def focal_loss(inputs, targets, alpha=1.0, gamma=2.0, reduction="mean"):
    """Binary focal loss with logits. inputs/targets: same shape. Returns scalar."""
    # TODO(synk): reduction='none' (elementwise output) not implemented in the kernel.
    assert reduction in ("mean", "sum")
    n = inputs.size
    x = inputs.reshape(-1)
    t = targets.reshape(-1)

    align = ALIGN_ROWS * LANES
    padded = ((n + align - 1) // align) * align
    if padded != n:
        # Small tail pad (content irrelevant — the kernel masks by index).
        x = jnp.concatenate([x, jnp.zeros((padded - n,), x.dtype)])
        t = jnp.concatenate([t, jnp.zeros((padded - n,), t.dtype)])

    rows = padded // LANES
    row_tile = min(DEFAULT_ROW_TILE, rows)
    num_blocks = (rows + row_tile - 1) // row_tile
    needs_mask = (padded != n) or (rows % row_tile != 0)

    x2 = x.reshape(rows, LANES)
    t2 = t.reshape(rows, LANES)

    kernel = functools.partial(
        _focal_loss_kernel,
        gamma=float(gamma),
        n=n,
        row_tile=row_tile,
        needs_mask=needs_mask,
    )

    partials = pl.pallas_call(
        kernel,
        out_shape=jax.ShapeDtypeStruct((num_blocks, SUBLANES, LANES), jnp.float32),
        grid_spec=pltpu.PrefetchScalarGridSpec(
            num_scalar_prefetch=0,
            grid=(num_blocks,),
            in_specs=[
                pl.BlockSpec((row_tile, LANES), lambda i: (i, 0)),
                pl.BlockSpec((row_tile, LANES), lambda i: (i, 0)),
            ],
            out_specs=pl.BlockSpec((1, SUBLANES, LANES), lambda i: (i, 0, 0)),
        ),
        compiler_params=pltpu.CompilerParams(
            # Independent per-block partial sums -> grid can shard across both
            # TensorCores on v7x.
            dimension_semantics=("parallel",),
        ),
    )(x2, t2)

    total = jnp.sum(partials)
    if reduction == "mean":
        return total * (alpha / n)
    return total * alpha


def _focal_loss_ref(inputs, targets, alpha=1.0, gamma=2.0):
    x = inputs.astype(jnp.float32)
    t = targets.astype(jnp.float32)
    ce = jnp.maximum(x, 0.0) - x * t + jnp.log1p(jnp.exp(-jnp.abs(x)))
    pt = jnp.exp(-ce)
    return jnp.mean(alpha * (1.0 - pt) ** gamma * ce)


if __name__ == "__main__":
    key = jax.random.PRNGKey(0)
    k1, k2, k3, k4 = jax.random.split(key, 4)

    # Node-level binary classification logits (e.g. fraud-detection scores).
    n_nodes = 2048
    logits = jax.random.normal(k1, (n_nodes,), dtype=jnp.float32) * 2.0
    # Imbalanced binary targets (~5% positive), matching the fraud setting.
    targets = (jax.random.uniform(k2, (n_nodes,)) < 0.05).astype(jnp.float32)

    loss = focal_loss(logits, targets)
    jax.block_until_ready(loss)
    ref = _focal_loss_ref(logits, targets)
    assert jnp.allclose(loss, ref, rtol=1e-5, atol=1e-6), (loss, ref)

    # Unaligned size exercises the in-kernel tail mask.
    n_odd = 1000
    logits2 = jax.random.normal(k3, (n_odd,), dtype=jnp.float32)
    targets2 = (jax.random.uniform(k4, (n_odd,)) < 0.05).astype(jnp.float32)
    loss2 = focal_loss(logits2, targets2)
    jax.block_until_ready(loss2)
    ref2 = _focal_loss_ref(logits2, targets2)
    assert jnp.allclose(loss2, ref2, rtol=1e-5, atol=1e-6), (loss2, ref2)

    print("KERNEL_OK")
</pallas_src>

<mosaic_0001>
module attributes {stable_mosaic.version = 11 : i64} {
  func.func @_focal_loss_kernel(%arg0: i32, %arg1: memref<32x128xf32, #tpu.memory_space<vmem>>, %arg2: memref<32x128xf32, #tpu.memory_space<vmem>>, %arg3: memref<1x8x128xf32, #tpu.memory_space<vmem>>) attributes {dimension_semantics = [#tpu.dimension_semantics<parallel>], iteration_bounds = array<i64: 1>, scalar_prefetch = 0 : i64, scratch_operands = 0 : i64, tpu.core_type = #tpu.core_type<tc>, window_params = [{transform_indices = @transform_0, window_bounds = array<i64: 32, 128>}, {transform_indices = @transform_1, window_bounds = array<i64: 32, 128>}, {transform_indices = @transform_2, window_bounds = array<i64: 1, 8, 128>}]} {
    %c0 = arith.constant 0 : index
    %c0_0 = arith.constant 0 : index
    %0 = vector.load %arg1[%c0, %c0_0] : memref<32x128xf32, #tpu.memory_space<vmem>>, vector<32x128xf32>
    %c0_1 = arith.constant 0 : index
    %c0_2 = arith.constant 0 : index
    %1 = vector.load %arg2[%c0_1, %c0_2] : memref<32x128xf32, #tpu.memory_space<vmem>>, vector<32x128xf32>
    %cst = arith.constant 0.000000e+00 : f32
    %2 = vector.broadcast %cst : f32 to vector<32x128xf32>
    %3 = arith.maximumf %0, %2 : vector<32x128xf32>
    %4 = arith.mulf %0, %1 : vector<32x128xf32>
    %5 = arith.subf %3, %4 : vector<32x128xf32>
    %6 = math.absf %0 : vector<32x128xf32>
    %cst_3 = arith.constant 0.000000e+00 : f32
    %7 = vector.broadcast %cst_3 : f32 to vector<32x128xf32>
    %8 = arith.subf %7, %6 : vector<32x128xf32>
    %9 = math.exp %8 : vector<32x128xf32>
    %10 = math.log1p %9 : vector<32x128xf32>
    %11 = arith.addf %5, %10 : vector<32x128xf32>
    %cst_4 = arith.constant 0.000000e+00 : f32
    %12 = vector.broadcast %cst_4 : f32 to vector<32x128xf32>
    %13 = arith.subf %12, %11 : vector<32x128xf32>
    %14 = math.exp %13 : vector<32x128xf32>
    %cst_5 = arith.constant 1.000000e+00 : f32
    %15 = vector.broadcast %cst_5 : f32 to vector<32x128xf32>
    %16 = arith.subf %15, %14 : vector<32x128xf32>
    %17 = arith.mulf %16, %16 : vector<32x128xf32>
    %18 = arith.mulf %17, %11 : vector<32x128xf32>
    %19 = tpu.iota {dimensions = array<i32: 0>} : vector<32x128xi32>
    %20 = tpu.iota {dimensions = array<i32: 1>} : vector<32x128xi32>
    %c32_i32 = arith.constant 32 : i32
    %21 = arith.muli %arg0, %c32_i32 : i32
    %22 = vector.broadcast %21 : i32 to vector<32x128xi32>
    %23 = arith.addi %22, %19 : vector<32x128xi32>
    %c128_i32 = arith.constant 128 : i32
    %24 = vector.broadcast %c128_i32 : i32 to vector<32x128xi32>
    %25 = arith.muli %23, %24 : vector<32x128xi32>
    %26 = arith.addi %25, %20 : vector<32x128xi32>
    %c2048_i32 = arith.constant 2048 : i32
    %27 = vector.broadcast %c2048_i32 : i32 to vector<32x128xi32>
    %28 = arith.cmpi slt, %26, %27 : vector<32x128xi32>
    %cst_6 = arith.constant 0.000000e+00 : f32
    %29 = vector.broadcast %cst_6 : f32 to vector<32x128xf32>
    %30 = arith.select %28, %18, %29 : vector<32x128xi1>, vector<32x128xf32>
    %31 = vector.shape_cast %30 : vector<32x128xf32> to vector<4x8x128xf32>
    %cst_7 = arith.constant dense<0.000000e+00> : vector<8x128xf32>
    %32 = vector.multi_reduction <add>, %31, %cst_7 [0] : vector<4x8x128xf32> to vector<8x128xf32>
    %33 = vector.shape_cast %32 : vector<8x128xf32> to vector<1x8x128xf32>
    %c0_8 = arith.constant 0 : index
    %c0_9 = arith.constant 0 : index
    %c0_10 = arith.constant 0 : index
    %34 = vector.load %arg3[%c0_8, %c0_9, %c0_10] : memref<1x8x128xf32, #tpu.memory_space<vmem>>, vector<1x8x128xf32>
    tpu.vector_store %arg3[%c0_8, %c0_9, %c0_10], %33 {strides = array<i32>} : memref<1x8x128xf32, #tpu.memory_space<vmem>>, vector<1x8x128xf32>,
    return
  }
  func.func @transform_0(%arg0: i32) -> (i32, i32) {
    %c0_i32 = arith.constant 0 : i32
    %c0_i32_0 = arith.constant 0 : i32
    return %arg0, %c0_i32 : i32, i32
  }
  func.func @transform_1(%arg0: i32) -> (i32, i32) {
    %c0_i32 = arith.constant 0 : i32
    %c0_i32_0 = arith.constant 0 : i32
    return %arg0, %c0_i32 : i32, i32
  }
  func.func @transform_2(%arg0: i32) -> (i32, i32, i32) {
    %c0_i32 = arith.constant 0 : i32
    %c0_i32_0 = arith.constant 0 : i32
    %c0_i32_1 = arith.constant 0 : i32
    return %arg0, %c0_i32, %c0_i32_0 : i32, i32, i32
  }
}

</mosaic_0001>

<bundles_post_ra>
// kernel: tpu_custom_call.1
= control target key start
LH: loop header
LB: loop body
LE: loop exit
PB: predicated region body
PF: predicated region fallthrough
CT: control target
= control target key end

     0   :  { %7 = vsyncpa [#allocation3], 0  ;;  %s368_s0 = inlined_call_operand.hbm [shape: f32[32,128], index: 0, kind: input, shape index: {}]   ;;  %s369_s1 = inlined_call_operand.hbm [shape: f32[32,128], index: 1, kind: input, shape index: {}]   ;;  %s370_s2 = inlined_call_operand.hbm [shape: f32[1,8,128], index: 2, kind: output, shape index: {}]  }
   0x1   :  { %8 = vsyncpa [#allocation6], 0 }
   0x2   :  { %9 = vsyncpa [#allocation4], 0  ;;  %s290_s9 = smov [#allocation2]   ;;  %s218_s13 = scalar_lea.hbm %s368_s0, 512 }
   0x3   :  { %s15_s10 = sshll.u32 %s290_s9, 4  ;;  %p219_p0 = scmp.ne.s32.totalorder %s368_s0, %s218_s13  ;;  %s16_s10 = int_to_ptr.vmem [resolvable:$true] %s15_s10 }
   0x4   :  { %p222_p1 = scmp.lt.u32.totalorder %s218_s13, %s368_s0 }
   0x6   :  { %p224_p2 = pnand %p222_p1, %p219_p0 }
   0x8   :  { %227 = shalt.err (!%p224_p2)
}
   0x9   :  { %s228_s18 = scalar_lea.vmem %s16_s10, 512  ;;  %p233_p4 = scmp.lt.s32.totalorder %s16_s10, %s16_s10 }
   0xa   :  { %p229_p3 = scmp.ne.s32.totalorder %s16_s10, %s228_s18  ;;  %p234_p5 = scmp.lt.s32.totalorder %s228_s18, %s228_s18 }
   0xc   :  { %p235_p6 = por %p234_p5, %p233_p4 }
   0xe   :  { %p236_p7 = pnand %p235_p6, %p229_p3 }
  0x10   :  { %239 = shalt.err (!%p236_p7)
}
  0x11   :  { %s291_s19 = smov 128   ;;  %s292_s20 = smov 8  }
  0x12   :  { %21 = dma.hbm_to_vmem [thread:$0]  %s368_s0, 512, %s16_s10, [#allocation3], %s291_s19, %s291_s19, %s292_s20  }
  0x13   :  { %s293_s23 = smov [#allocation5]   ;;  %s240_s27 = scalar_lea.hbm %s369_s1, 512 }
  0x14   :  { %s27_s24 = sshll.u32 %s293_s23, 4  ;;  %p241_p8 = scmp.ne.s32.totalorder %s369_s1, %s240_s27  ;;  %s28_s24 = int_to_ptr.vmem [resolvable:$true] %s27_s24 }
  0x15   :  { %p244_p9 = scmp.lt.u32.totalorder %s240_s27, %s369_s1 }
  0x17   :  { %p246_p10 = pnand %p244_p9, %p241_p8 }
  0x19   :  { %249 = shalt.err (!%p246_p10)
}
  0x1a   :  { %s250_s4 = scalar_lea.vmem %s28_s24, 512  ;;  %p255_p12 = scmp.lt.s32.totalorder %s28_s24, %s28_s24 }
  0x1b   :  { %p251_p11 = scmp.ne.s32.totalorder %s28_s24, %s250_s4  ;;  %p256_p13 = scmp.lt.s32.totalorder %s250_s4, %s250_s4 }
  0x1d   :  { %p257_p0 = por %p256_p13, %p255_p12 }
  0x1f   :  { %p258_p1 = pnand %p257_p0, %p251_p11 }
  0x21   :  { %261 = shalt.err (!%p258_p1)
}
  0x22   :  { %33 = dma.hbm_to_vmem [thread:$0]  %s369_s1, 512, %s28_s24, [#allocation6], %s291_s19, %s291_s19, %s292_s20  }
  0x23   :  { %284 = dma.done.wait [#allocation3], 512  }
  0x24   :  { %285 = vsyncadd [#allocation3], 4294966784 }
  0x25   :  { %286 = dma.done.wait [#allocation6], 512  }
  0x26   :  { %287 = vsyncadd [#allocation6], 4294966784  ;;  %v40_v0 = vld [vmem:[#allocation2] sm:$0xff]  ;;  %v41_v1 = vld [vmem:[#allocation2 + $0x8] sm:$0xff]  ;;  %s294_s1 = smov [#allocation7]  }
  0x27   :  { %v334_v2 = vld [vmem:[#allocation2 + $0x10] sm:$0xff]  ;;  %v336_v3 = vld [vmem:[#allocation2 + $0x18] sm:$0xff]  ;;  %v60_v4 = vand.u32 2147483647, %v40_v0  ;;  %v61_v5 = vand.u32 2147483647, %v41_v1 }
  0x28   :  { %v62_v6 = vand.u32 2147483647, %v334_v2  ;;  %v63_v7 = vand.u32 2147483647, %v336_v3  ;;  %v44_v26 = vld [vmem:[#allocation5] sm:$0xff]  ;;  %v45_v28 = vld [vmem:[#allocation5 + $0x8] sm:$0xff] }
  0x29   :  { %v64_v8 = vsub.f32 0.0, %v60_v4  ;;  %v65_v9 = vsub.f32 0.0, %v61_v5  ;;  %v46_v29 = vld [vmem:[#allocation5 + $0x10] sm:$0xff]  ;;  %v47_v32 = vld [vmem:[#allocation5 + $0x18] sm:$0xff]  ;;  %v48_v33 = vmax.f32 %v40_v0, 0.0  ;;  %v52_v34 = vmul.f32 %v44_v26, %v40_v0  ;;  %s179_s6 = sshll.u32 %s294_s1, 4  ;;  %s180_s6 = int_to_ptr.vmem [resolvable:$true] %s179_s6 }
  0x2a   :  { %v66_v10 = vsub.f32 0.0, %v62_v6  ;;  %v67_v11 = vsub.f32 0.0, %v63_v7  ;;  %v49_v37 = vmax.f32 %v41_v1, 0.0  ;;  %v53_v38 = vmul.f32 %v45_v28, %v41_v1  ;;  %s262_s7 = scalar_lea.vmem %s180_s6, 128  ;;  %p267_p3 = scmp.lt.s32.totalorder %s180_s6, %s180_s6 }
  0x2b   :  { %v68_v12 = vmul.f32 1.442695, %v64_v8  ;;  %v70_v13 = vmul.f32 1.442695, %v65_v9  ;;  %v50_v41 = vmax.f32 %v334_v2, 0.0  ;;  %v54_v42 = vmul.f32 %v46_v29, %v334_v2  ;;  %p263_p2 = scmp.ne.s32.totalorder %s180_s6, %s262_s7  ;;  %p268_p4 = scmp.lt.s32.totalorder %s262_s7, %s262_s7 }
  0x2c   :  { %v72_v14 = vmul.f32 1.442695, %v66_v10  ;;  %v74_v15 = vmul.f32 1.442695, %v67_v11  ;;  %v51_v44 = vmax.f32 %v336_v3, 0.0  ;;  %v55_v45 = vmul.f32 %v47_v32, %v336_v3 }
  0x2d   :  { %194 = vpow2.f32 %v68_v12  ;;  %v56_v49 = vsub.f32 %v48_v33, %v52_v34  ;;  %v57_v54 = vsub.f32 %v49_v37, %v53_v38  ;;  %v58_v59 = vsub.f32 %v50_v41, %v54_v42  ;;  %p269_p5 = por %p268_p4, %p267_p3 }
  0x2e   :  { %196 = vpow2.f32 %v70_v13  ;;  %v59_v1 = vsub.f32 %v51_v44, %v55_v45  ;;  %v140_v7 = vlaneseq }
  0x2f   :  { %198 = vpow2.f32 %v72_v14  ;;  %p270_p6 = pnand %p269_p5, %p263_p2 }
  0x30   :  { %200 = vpow2.f32 %v74_v15 }
  0x37   :  { %v195_v16 = vpop.eup %194 }
  0x38   :  { %v197_v17 = vpop.eup %196  ;;  %v76_v18 = vadd.f32 1.0, %v195_v16  ;;  %v79_v23 = vmul.f32 -0.5, %v195_v16  ;;  %v82_v35 = vand.u32 2147483647, %v195_v16 }
  0x39   :  { %v199_v19 = vpop.eup %198  ;;  %v85_v20 = vadd.f32 1.0, %v197_v17  ;;  %v88_v24 = vmul.f32 -0.5, %v197_v17  ;;  %v91_v39 = vand.u32 2147483647, %v197_v17 }
  0x3a   :  { %v201_v21 = vpop.eup %200  ;;  %202 = vlog2.f32 %v76_v18  ;;  %v94_v22 = vadd.f32 1.0, %v199_v19  ;;  %v97_v27 = vmul.f32 -0.5, %v199_v19  ;;  %v80_v30 = vadd.f32 1.0, %v79_v23 }
  0x3b   :  { %204 = vlog2.f32 %v85_v20  ;;  %v103_v25 = vadd.f32 1.0, %v201_v21  ;;  %v106_v31 = vmul.f32 -0.5, %v201_v21  ;;  %v89_v36 = vadd.f32 1.0, %v88_v24 }
  0x3c   :  { %206 = vlog2.f32 %v94_v22  ;;  %v98_v40 = vadd.f32 1.0, %v97_v27  ;;  %v100_v43 = vand.u32 2147483647, %v199_v19  ;;  %v81_v46 = vmul.f32 %v195_v16, %v80_v30 }
  0x3d   :  { %208 = vlog2.f32 %v103_v25  ;;  %v107_v47 = vadd.f32 1.0, %v106_v31  ;;  %vm344_vm0 = vcmp.lt.f32.partialorder %v82_v35, 0.0004427343  ;;  %v90_v51 = vmul.f32 %v197_v17, %v89_v36 }
  0x3e   :  { %v109_v52 = vand.u32 2147483647, %v201_v21  ;;  %vm348_vm1 = vcmp.lt.f32.partialorder %v91_v39, 0.0004427343  ;;  %v99_v57 = vmul.f32 %v199_v19, %v98_v40  ;;  %vm101_vm2 = vcmp.lt.f32.partialorder %v100_v43, 0.0004427343 }
  0x3f   :  { %v108_v63 = vmul.f32 %v201_v21, %v107_v47  ;;  %v141_v16 = vshrl.u32 %v140_v7, 7  ;;  %v146_v23 = vand.u32 127, %v140_v7 }
  0x40   :  { %vm110_vm3 = vcmp.lt.f32.partialorder %v109_v52, 0.0004427343 }
  0x41   :  { %v142_v20 = vadd.s32 8, %v141_v16  ;;  %v143_v21 = vadd.s32 16, %v141_v16  ;;  %v144_v22 = vadd.s32 24, %v141_v16  ;;  %v153_v24 = vmul.u32 128, %v141_v16 }
  0x43   :  { %v154_v25 = vmul.u32 128, %v142_v20  ;;  %v155_v26 = vmul.u32 128, %v143_v21  ;;  %v157_v29 = vadd.s32 %v153_v24, %v146_v23 }
  0x44   :  { %v203_v48 = vpop.eup %202  ;;  %v156_v28 = vmul.u32 128, %v144_v22 }
  0x45   :  { %v205_v53 = vpop.eup %204  ;;  %v78_v55 = vmul.f32 0.6931472, %v203_v48  ;;  %v158_v32 = vadd.s32 %v154_v25, %v146_v23  ;;  %v159_v35 = vadd.s32 %v155_v26, %v146_v23  ;;  %vm161_vm4 = vcmp.lt.s32.totalorder %v157_v29, 2048 }
  0x46   :  { %v207_v58 = vpop.eup %206  ;;  %v87_v60 = vmul.f32 0.6931472, %v205_v53  ;;  %v160_v40 = vadd.s32 %v156_v28, %v146_v23 }
  0x47   :  { %v84_v61 = vsel %vm344_vm0, %v81_v46, %v78_v55  ;;  %v96_v62 = vmul.f32 0.6931472, %v207_v58  ;;  %v209_v0 = vpop.eup %208  ;;  %vm162_vm5 = vcmp.lt.s32.totalorder %v158_v32, 2048  ;;  %vm163_vm6 = vcmp.lt.s32.totalorder %v159_v35, 2048 }
  0x48   :  { %v93_v2 = vsel %vm348_vm1, %v90_v51, %v87_v60  ;;  %v112_v3 = vadd.f32 %v84_v61, %v56_v49  ;;  %v105_v5 = vmul.f32 0.6931472, %v209_v0  ;;  %vm164_vm7 = vcmp.lt.s32.totalorder %v160_v40, 2048 }
  0x49   :  { %v102_v4 = vsel %vm101_vm2, %v99_v57, %v96_v62  ;;  %v113_v6 = vadd.f32 %v93_v2, %v57_v54 }
  0x4a   :  { %v114_v8 = vadd.f32 %v102_v4, %v58_v59  ;;  %v116_v9 = vsub.f32 0.0, %v112_v3  ;;  %v111_v10 = vsel %vm110_vm3, %v108_v63, %v105_v5 }
  0x4b   :  { %v117_v11 = vsub.f32 0.0, %v113_v6  ;;  %v115_v12 = vadd.f32 %v111_v10, %v59_v1 }
  0x4c   :  { %v118_v13 = vsub.f32 0.0, %v114_v8  ;;  %v120_v14 = vmul.f32 1.442695, %v116_v9 }
  0x4d   :  { %v122_v15 = vmul.f32 1.442695, %v117_v11  ;;  %v119_v17 = vsub.f32 0.0, %v115_v12 }
  0x4e   :  { %210 = vpow2.f32 %v120_v14  ;;  %v124_v18 = vmul.f32 1.442695, %v118_v13 }
  0x4f   :  { %212 = vpow2.f32 %v122_v15  ;;  %v126_v19 = vmul.f32 1.442695, %v119_v17 }
  0x50   :  { %214 = vpow2.f32 %v124_v18 }
  0x51   :  { %216 = vpow2.f32 %v126_v19 }
  0x58   :  { %v211_v27 = vpop.eup %210 }
  0x59   :  { %v213_v30 = vpop.eup %212  ;;  %v128_v31 = vsub.f32 1.0, %v211_v27 }
  0x5a   :  { %v215_v33 = vpop.eup %214  ;;  %v129_v34 = vsub.f32 1.0, %v213_v30 }
  0x5b   :  { %v130_v36 = vsub.f32 1.0, %v215_v33  ;;  %v132_v37 = vmul.f32 %v128_v31, %v128_v31  ;;  %v217_v38 = vpop.eup %216 }
  0x5c   :  { %v133_v39 = vmul.f32 %v129_v34, %v129_v34  ;;  %v131_v41 = vsub.f32 1.0, %v217_v38 }
  0x5d   :  { %v134_v42 = vmul.f32 %v130_v36, %v130_v36  ;;  %v136_v43 = vmul.f32 %v132_v37, %v112_v3 }
  0x5e   :  { %v137_v44 = vmul.f32 %v133_v39, %v113_v6  ;;  %v135_v45 = vmul.f32 %v131_v41, %v131_v41 }
  0x5f   :  { %v138_v46 = vmul.f32 %v134_v42, %v114_v8  ;;  %v165_v47 = vsel %vm161_vm4, %v136_v43, 0.0 }
  0x60   :  { %v166_v48 = vsel %vm162_vm5, %v137_v44, 0.0  ;;  %v139_v49 = vmul.f32 %v135_v45, %v115_v12 }
  0x61   :  { %v167_v50 = vsel %vm163_vm6, %v138_v46, 0.0  ;;  %v169_v51 = vadd.f32 %v166_v48, %v165_v47 }
  0x62   :  { %v168_v52 = vsel %vm164_vm7, %v139_v49, 0.0 }
  0x63   :  { %v170_v53 = vadd.f32 %v169_v51, %v167_v50 }
  0x65   :  { %v171_v54 = vadd.f32 %v170_v53, %v168_v52 }
  0x67   :  { %172 = vst [vmem:[#allocation7] sm:$0xff] %v171_v54 }
  0x68   :  { %273 = shalt.err (!%p270_p6)
}
  0x69   :  { %s274_s10 = scalar_lea.hbm %s370_s2, 128 }
  0x6a   :  { %p275_p7 = scmp.ne.s32.totalorder %s370_s2, %s274_s10  ;;  %p278_p8 = scmp.lt.u32.totalorder %s274_s10, %s370_s2 }
  0x6c   :  { %p280_p9 = pnand %p278_p8, %p275_p7 }
  0x6e   :  { %283 = shalt.err (!%p280_p9)
}
  0x6f   :  { %182 = dma.vmem_to_hbm [thread:$0]  %s180_s6, 128, %s370_s2, [#allocation4]  }
  0x70   :  { %288 = dma.done.wait [#allocation4], 128  }
  0x71   :  { %289 = vsyncadd [#allocation4], 4294967168 }
  0x72   :  { %186 = vsyncpa [#allocation3], 1 }
  0x73   :  { %187 = vsyncpa [#allocation6], 1 }
  0x74   :  { %188 = vsyncpa [#allocation4], 1 }

</bundles_post_ra>
